<compile_context>
chip_gen: v6e
topology: v6e:2x2x1
jax: 0.10.0
libtpu: 0.0.40
codegen_flags: <defaults>
</compile_context>

<pallas_src>
import jax
import jax.numpy as jnp
from jax.experimental import pallas as pl
from jax.experimental.pallas import tpu as pltpu


# ----------------------------------------------------------------------------- kernel
def pnet_kernel(z_ref, c_ref, w1z_ref, w1c_ref, b1_ref, w23_ref, b23_ref, out_ref):
    # Fused eval-mode MLP on one batch tile: all weights resident in VMEM.
    z_bf = z_ref[...].astype(jnp.bfloat16)                       # (TB, z_dim)
    c_bf = c_ref[...].astype(jnp.bfloat16)                       # (TB, c_dim)

    # h1 = relu(concat(z, c) @ w1 + b1), with the concat fused via pre-split w1.
    h1 = jnp.dot(z_bf, w1z_ref[...], preferred_element_type=jnp.float32)
    h1 = h1 + jnp.dot(c_bf, w1c_ref[...], preferred_element_type=jnp.float32)
    h1 = jnp.maximum(h1 + b1_ref[...], 0.0)                      # (TB, H1) f32

    # lin2 and lin3 pre-folded offline into a single (H1, X_dim) matmul.
    h = jnp.dot(h1.astype(jnp.bfloat16), w23_ref[...],
                preferred_element_type=jnp.float32)              # (TB, X_dim)
    out_ref[...] = jax.nn.sigmoid(h + b23_ref[...])


# ----------------------------------------------------------------------------- wrapper
def pnet_forward(z, c, fused_params, *, block_b=128):
    """z: (B, z_dim) f32, c: (B, c_dim) f32 -> (B, X_dim) f32 (eval-mode P_net)."""
    w1z, w1c, b1, w23, b23 = fused_params
    B, z_dim = z.shape
    c_dim = c.shape[1]
    H1 = w1z.shape[1]
    X_dim = w23.shape[1]

    # Pad batch to a multiple of the block size (sliced off at the end).
    Bp = ((B + block_b - 1) // block_b) * block_b
    if Bp != B:
        z = jnp.pad(z, ((0, Bp - B), (0, 0)))
        c = jnp.pad(c, ((0, Bp - B), (0, 0)))

    grid = (Bp // block_b,)

    # Batch-tiled activations; weights get constant index_maps -> resident tiles.
    in_specs = [
        pl.BlockSpec((block_b, z_dim), lambda i: (i, 0)),
        pl.BlockSpec((block_b, c_dim), lambda i: (i, 0)),
        pl.BlockSpec((z_dim, H1), lambda i: (0, 0)),
        pl.BlockSpec((c_dim, H1), lambda i: (0, 0)),
        pl.BlockSpec((1, H1), lambda i: (0, 0)),
        pl.BlockSpec((H1, X_dim), lambda i: (0, 0)),
        pl.BlockSpec((1, X_dim), lambda i: (0, 0)),
    ]
    out_specs = pl.BlockSpec((block_b, X_dim), lambda i: (i, 0))

    cost = pl.CostEstimate(
        flops=2 * Bp * ((z_dim + c_dim) * H1 + H1 * X_dim),
        transcendentals=Bp * X_dim,
        bytes_accessed=(Bp * (z_dim + c_dim) * 4            # z, c (f32)
                        + (z_dim + c_dim) * H1 * 2           # w1 (bf16)
                        + H1 * X_dim * 2                     # w23 (bf16)
                        + (H1 + X_dim) * 4                   # biases (f32)
                        + Bp * X_dim * 4),                   # out (f32)
    )

    out = pl.pallas_call(
        pnet_kernel,
        out_shape=jax.ShapeDtypeStruct((Bp, X_dim), jnp.float32),
        grid=grid,
        in_specs=in_specs,
        out_specs=out_specs,
        compiler_params=pltpu.CompilerParams(dimension_semantics=("parallel",)),
        cost_estimate=cost,
    )(z, c, w1z, w1c, b1, w23, b23)

    return out[:B]


# ----------------------------------------------------------------------------- params
def init_raw_params(key, z_dim, c_dim, hidden_size, X_dim):
    """PyTorch nn.Linear-style init U(-1/sqrt(fan_in), 1/sqrt(fan_in)).
    Weights stored as (in, out) so forward is x @ W + b; biases as (1, out)."""
    dims = [(z_dim + c_dim, hidden_size * 2),
            (hidden_size * 2, hidden_size * 8),
            (hidden_size * 8, X_dim)]
    params = []
    for fan_in, fan_out in dims:
        key, kw, kb = jax.random.split(key, 3)
        bound = 1.0 / float(fan_in) ** 0.5
        w = jax.random.uniform(kw, (fan_in, fan_out), jnp.float32, -bound, bound)
        b = jax.random.uniform(kb, (1, fan_out), jnp.float32, -bound, bound)
        params += [w, b]
    return tuple(params)


def fold_params_for_eval(raw_params, z_dim):
    """Host-side, one-time fold for eval mode:
      * split w1 at z_dim so the z/c concat can be fused into the kernel,
      * fold lin2->lin3 (no nonlinearity between them):  w23 = w2@w3,  b23 = b2@w3 + b3,
      * cast matmul weights to bf16 (f32 accumulation in-kernel), keep biases f32."""
    w1, b1, w2, b2, w3, b3 = raw_params
    w23 = (w2 @ w3).astype(jnp.bfloat16)
    b23 = (b2 @ w3 + b3).astype(jnp.float32)
    w1z = w1[:z_dim].astype(jnp.bfloat16)
    w1c = w1[z_dim:].astype(jnp.bfloat16)
    return (w1z, w1c, b1.astype(jnp.float32), w23, b23)


# ----------------------------------------------------------------------------- refs
def pnet_reference_f32(z, c, raw_params):
    """Exact eval-mode module math in full f32 (unfused, unfolded)."""
    w1, b1, w2, b2, w3, b3 = raw_params
    lat = jnp.concatenate([z, c], axis=1)
    h1 = jnp.maximum(lat @ w1 + b1, 0.0)        # dropout = identity in eval
    h2 = h1 @ w2 + b2
    return jax.nn.sigmoid(h2 @ w3 + b3)


def pnet_reference_kernel_math(z, c, fused_params):
    """Pure-JAX mirror of the exact arithmetic done inside the Pallas kernel."""
    w1z, w1c, b1, w23, b23 = fused_params
    h1 = (jnp.dot(z.astype(jnp.bfloat16), w1z, preferred_element_type=jnp.float32)
          + jnp.dot(c.astype(jnp.bfloat16), w1c, preferred_element_type=jnp.float32)
          + b1)
    h1 = jnp.maximum(h1, 0.0)
    h = jnp.dot(h1.astype(jnp.bfloat16), w23, preferred_element_type=jnp.float32) + b23
    return jax.nn.sigmoid(h)


# ----------------------------------------------------------------------------- main
if __name__ == "__main__":
    # Small shapes consistent with the module, but with a real batch so the MXU
    # sees full tiles and the grid exercises the parallel batch axis.
    batch = 256                 # 2 grid blocks of 128 rows
    z_dim = 8
    c_dim = 8
    hidden_size = 32            # lin1 out = 64, lin2 out = 256 (folded away)
    X_dim = 128                 # lane-dense output (exactly one lane width)

    key = jax.random.PRNGKey(0)
    key, kz, kc = jax.random.split(key, 3)
    z = jax.random.normal(kz, (batch, z_dim), jnp.float32)
    c = jax.random.normal(kc, (batch, c_dim), jnp.float32)

    raw_params = init_raw_params(key, z_dim, c_dim, hidden_size, X_dim)
    fused_params = fold_params_for_eval(raw_params, z_dim)

    out = pnet_forward(z, c, fused_params)
    out = jax.block_until_ready(out)
    assert out.shape == (batch, X_dim)

    # 1) Kernel matches its own arithmetic (bf16 matmuls, f32 accumulation) tightly.
    ref_mirror = pnet_reference_kernel_math(z, c, fused_params)
    assert jnp.allclose(out, ref_mirror, atol=1e-4, rtol=1e-4), (
        float(jnp.max(jnp.abs(out - ref_mirror))))

    # 2) Folding + bf16 weights are a benign approximation of the exact f32 module.
    ref_exact = pnet_reference_f32(z, c, raw_params)
    assert jnp.allclose(out, ref_exact, atol=1.5e-2), (
        float(jnp.max(jnp.abs(out - ref_exact))))

    print("KERNEL_OK")
</pallas_src>

<mosaic_0001>
module attributes {stable_mosaic.version = 11 : i64} {
  func.func @pnet_kernel(%arg0: i32, %arg1: memref<128x8xf32, #tpu.memory_space<vmem>>, %arg2: memref<128x8xf32, #tpu.memory_space<vmem>>, %arg3: memref<8x64xbf16, #tpu.memory_space<vmem>>, %arg4: memref<8x64xbf16, #tpu.memory_space<vmem>>, %arg5: memref<1x64xf32, #tpu.memory_space<vmem>>, %arg6: memref<64x128xbf16, #tpu.memory_space<vmem>>, %arg7: memref<1x128xf32, #tpu.memory_space<vmem>>, %arg8: memref<128x128xf32, #tpu.memory_space<vmem>>) attributes {dimension_semantics = [#tpu.dimension_semantics<parallel>], iteration_bounds = array<i64: 2>, scalar_prefetch = 0 : i64, scratch_operands = 0 : i64, tpu.core_type = #tpu.core_type<tc>, window_params = [{transform_indices = @transform_0, window_bounds = array<i64: 128, 8>}, {transform_indices = @transform_1, window_bounds = array<i64: 128, 8>}, {pipeline_mode = #tpu.pipeline_mode<synchronous>, transform_indices = @transform_2, window_bounds = array<i64: 8, 64>}, {pipeline_mode = #tpu.pipeline_mode<synchronous>, transform_indices = @transform_3, window_bounds = array<i64: 8, 64>}, {pipeline_mode = #tpu.pipeline_mode<synchronous>, transform_indices = @transform_4, window_bounds = array<i64: 1, 64>}, {pipeline_mode = #tpu.pipeline_mode<synchronous>, transform_indices = @transform_5, window_bounds = array<i64: 64, 128>}, {pipeline_mode = #tpu.pipeline_mode<synchronous>, transform_indices = @transform_6, window_bounds = array<i64: 1, 128>}, {transform_indices = @transform_7, window_bounds = array<i64: 128, 128>}]} {
    %c0 = arith.constant 0 : index
    %c0_0 = arith.constant 0 : index
    %0 = vector.load %arg1[%c0, %c0_0] : memref<128x8xf32, #tpu.memory_space<vmem>>, vector<128x8xf32>
    %1 = arith.truncf %0 : vector<128x8xf32> to vector<128x8xbf16>
    %c0_1 = arith.constant 0 : index
    %c0_2 = arith.constant 0 : index
    %2 = vector.load %arg2[%c0_1, %c0_2] : memref<128x8xf32, #tpu.memory_space<vmem>>, vector<128x8xf32>
    %3 = arith.truncf %2 : vector<128x8xf32> to vector<128x8xbf16>
    %c0_3 = arith.constant 0 : index
    %c0_4 = arith.constant 0 : index
    %4 = vector.load %arg3[%c0_3, %c0_4] : memref<8x64xbf16, #tpu.memory_space<vmem>>, vector<8x64xbf16>
    %cst = arith.constant dense<0.000000e+00> : vector<128x64xf32>
    %5 = tpu.matmul %1, %4, %cst {dimension_numbers = #tpu.dot_dimension_numbers<[1], [0], [0], [1], [0, 0, 1, 1], [], []>} : vector<128x8xbf16>, vector<8x64xbf16>, vector<128x64xf32> -> vector<128x64xf32>
    %c0_5 = arith.constant 0 : index
    %c0_6 = arith.constant 0 : index
    %6 = vector.load %arg4[%c0_5, %c0_6] : memref<8x64xbf16, #tpu.memory_space<vmem>>, vector<8x64xbf16>
    %cst_7 = arith.constant dense<0.000000e+00> : vector<128x64xf32>
    %7 = tpu.matmul %3, %6, %cst_7 {dimension_numbers = #tpu.dot_dimension_numbers<[1], [0], [0], [1], [0, 0, 1, 1], [], []>} : vector<128x8xbf16>, vector<8x64xbf16>, vector<128x64xf32> -> vector<128x64xf32>
    %8 = arith.addf %5, %7 : vector<128x64xf32>
    %c0_8 = arith.constant 0 : index
    %c0_9 = arith.constant 0 : index
    %9 = vector.load %arg5[%c0_8, %c0_9] : memref<1x64xf32, #tpu.memory_space<vmem>>, vector<1x64xf32>
    %10 = vector.broadcast %9 : vector<1x64xf32> to vector<128x64xf32>
    %11 = arith.addf %8, %10 : vector<128x64xf32>
    %cst_10 = arith.constant 0.000000e+00 : f32
    %12 = vector.broadcast %cst_10 : f32 to vector<128x64xf32>
    %13 = arith.maximumf %11, %12 : vector<128x64xf32>
    %14 = arith.truncf %13 : vector<128x64xf32> to vector<128x64xbf16>
    %c0_11 = arith.constant 0 : index
    %c0_12 = arith.constant 0 : index
    %15 = vector.load %arg6[%c0_11, %c0_12] : memref<64x128xbf16, #tpu.memory_space<vmem>>, vector<64x128xbf16>
    %cst_13 = arith.constant dense<0.000000e+00> : vector<128x128xf32>
    %16 = tpu.matmul %14, %15, %cst_13 {dimension_numbers = #tpu.dot_dimension_numbers<[1], [0], [0], [1], [0, 0, 1, 1], [], []>} : vector<128x64xbf16>, vector<64x128xbf16>, vector<128x128xf32> -> vector<128x128xf32>
    %c0_14 = arith.constant 0 : index
    %c0_15 = arith.constant 0 : index
    %17 = vector.load %arg7[%c0_14, %c0_15] : memref<1x128xf32, #tpu.memory_space<vmem>>, vector<1x128xf32>
    %18 = vector.broadcast %17 : vector<1x128xf32> to vector<128x128xf32>
    %19 = arith.addf %16, %18 : vector<128x128xf32>
    %20 = arith.negf %19 : vector<128x128xf32>
    %21 = math.exp %20 : vector<128x128xf32>
    %cst_16 = arith.constant 1.000000e+00 : f32
    %22 = vector.broadcast %cst_16 : f32 to vector<128x128xf32>
    %23 = arith.addf %22, %21 : vector<128x128xf32>
    %24 = arith.divf %22, %23 : vector<128x128xf32>
    %c0_17 = arith.constant 0 : index
    %c0_18 = arith.constant 0 : index
    %25 = vector.load %arg8[%c0_17, %c0_18] : memref<128x128xf32, #tpu.memory_space<vmem>>, vector<128x128xf32>
    tpu.vector_store %arg8[%c0_17, %c0_18], %24 {strides = array<i32>} : memref<128x128xf32, #tpu.memory_space<vmem>>, vector<128x128xf32>,
    return
  }
  func.func @transform_0(%arg0: i32) -> (i32, i32) {
    %c0_i32 = arith.constant 0 : i32
    %c0_i32_0 = arith.constant 0 : i32
    return %arg0, %c0_i32 : i32, i32
  }
  func.func @transform_1(%arg0: i32) -> (i32, i32) {
    %c0_i32 = arith.constant 0 : i32
    %c0_i32_0 = arith.constant 0 : i32
    return %arg0, %c0_i32 : i32, i32
  }
  func.func @transform_2(%arg0: i32) -> (i32, i32) {
    %c0_i32 = arith.constant 0 : i32
    %c0_i32_0 = arith.constant 0 : i32
    %c0_i32_1 = arith.constant 0 : i32
    return %c0_i32, %c0_i32_0 : i32, i32
  }
  func.func @transform_3(%arg0: i32) -> (i32, i32) {
    %c0_i32 = arith.constant 0 : i32
    %c0_i32_0 = arith.constant 0 : i32
    %c0_i32_1 = arith.constant 0 : i32
    return %c0_i32, %c0_i32_0 : i32, i32
  }
  func.func @transform_4(%arg0: i32) -> (i32, i32) {
    %c0_i32 = arith.constant 0 : i32
    %c0_i32_0 = arith.constant 0 : i32
    %c0_i32_1 = arith.constant 0 : i32
    return %c0_i32, %c0_i32_0 : i32, i32
  }
  func.func @transform_5(%arg0: i32) -> (i32, i32) {
    %c0_i32 = arith.constant 0 : i32
    %c0_i32_0 = arith.constant 0 : i32
    %c0_i32_1 = arith.constant 0 : i32
    return %c0_i32, %c0_i32_0 : i32, i32
  }
  func.func @transform_6(%arg0: i32) -> (i32, i32) {
    %c0_i32 = arith.constant 0 : i32
    %c0_i32_0 = arith.constant 0 : i32
    %c0_i32_1 = arith.constant 0 : i32
    return %c0_i32, %c0_i32_0 : i32, i32
  }
  func.func @transform_7(%arg0: i32) -> (i32, i32) {
    %c0_i32 = arith.constant 0 : i32
    %c0_i32_0 = arith.constant 0 : i32
    return %arg0, %c0_i32 : i32, i32
  }
}

</mosaic_0001>

<bundles_post_ra>
// kernel: tpu_custom_call.1
= control target key start
LH: loop header
LB: loop body
LE: loop exit
PB: predicated region body
PF: predicated region fallthrough
CT: control target
= control target key end

     0   :  { %12 = vsyncpa [#allocation3], 0  ;;  %s1645_s0 = inlined_call_operand.vmem [shape: f32[256,8], index: 0, kind: input, shape index: {}]   ;;  %s1646_s1 = inlined_call_operand.vmem [shape: f32[256,8], index: 1, kind: input, shape index: {}]   ;;  %s1647_s2 = inlined_call_operand.vmem [shape: bf16[8,64], index: 2, kind: input, shape index: {}]   ;;  %s1648_s3 = inlined_call_operand.vmem [shape: bf16[8,64], index: 3, kind: input, shape index: {}]   ;;  %s1649_s4 = inlined_call_operand.vmem [shape: f32[1,64], index: 4, kind: input, shape index: {}]   ;;  %s1650_s5 = inlined_call_operand.vmem [shape: bf16[64,128], index: 5, kind: input, shape index: {}]   ;;  %s1651_s6 = inlined_call_operand.vmem [shape: f32[1,128], index: 6, kind: input, shape index: {}]   ;;  %s1652_s7 = inlined_call_operand.hbm [shape: f32[256,128], index: 7, kind: output, shape index: {}]  }
   0x1   :  { %14 = vsyncpa [#allocation3 + $0x1], 0  ;;  %s1381_s24 = smov 0   ;;  %s1383_s25 = smov 0  }
   0x2   :  { %s1385_s26 = smov 0   ;;  %s1387_s27 = smov 0  }
   0x3 LB: > { %s1402_s28 = sadd.s32 4294967295, %s1336_s27   ;;  %s1011_s29 = sadd.s32 4294967294, %s1336_s27   ;;  %s1336_s27 = sphi %s1387_s27, %s1658_s27   ;;  %s1332_s26 = sphi %s1385_s26, %s1657_s26   ;;  %s1328_s25 = sphi %s1383_s25, %s1656_s25   ;;  %s1324_s24 = sphi %s1381_s24, %s1655_s24  }
   0x4   : > { %s1406_s30 = sadd.s32 1, %s1336_s27   ;;  %s184_s8 = sadd.s32 1, %s1332_s26 }
   0x5   : > { %s181_s9 = ssub.s32 %s1336_s27, %s1406_s30  ;;  %p194_p0 = scmp.ne.s32.totalorder %s1332_s26, %s1328_s25 }
   0x6   : > { %p182_p1 = scmp.eq.s32.totalorder %s181_s9, 0  ;;  %p195_p2 = scmp.eq.s32.totalorder %s1402_s28, 1 }
   0x7   : > { %p200_p3 = scmp.ne.s32.totalorder %s1328_s25, %s1324_s24  ;;  %p201_p4 = scmp.eq.s32.totalorder %s1011_s29, 1 }
   0x8   : > { %s1417_s10 = scalar_select %p182_p1, %s1332_s26, %s184_s8  }
   0x9   : > { %p1419_p5 = por %p195_p2, %p194_p0  ;;  %p1423_p6 = por %p201_p4, %p200_p3 }
   0xa   : > { %p1014_p7 = scmp.ge.s32.totalorder %s1336_s27, 1  ;;  %p252_p8 = scmp.lt.s32.totalorder %s1336_s27, 3 }
   0xc   : > { %p253_p9 = pnand %p1014_p7, %p252_p8 }
   0xd   : > { %s1016_s15 = sshll.u32 (!%p253_p9), %s1402_s28, 4  ;;  %s286_s23 = sand.u32 (!%p253_p9), 1, %s1328_s25  }
   0xe   : > { %256 = sbr.rel (%p253_p9) target bundleno = 522 (0x20a), region = 48  ;;  %p290_p10 = scmp.lt.s32.totalorder (!%p253_p9), %s1016_s15, 31 }
   0xf   : > { %s1071_s9 = sshll.u32 (!%p253_p9), %s1402_s28, 11  ;;  %s1605_s17 = scalar_lea.sflag (!%p253_p9), [#allocation3], %s286_s23 }
  0x10   : > { %s1597_s16 = scalar_lea.hbm (!%p253_p9), %s1652_s7, %s1071_s9 }
  0x13   : > { %v352_v0 = vld [vmem:[%s1648_s3] sm:$0xf]  ;;  %vm378_vm0 = vcmask 1043456   ;;  %s1660_s15 = smov (!%p290_p10, %s1016_s15), 31  ;;  %vm353_vm1 = vcmask 64512   ;;  %v1208_v52 = vld [vmem:[%s1650_s5 + $0x18] sm:$0xff]  }
  0x14   : > { %1165 = vmatprep.subr.msk.bf16.mxu1 %vm378_vm0, %v352_v0  ;;  %v380_v1 = vsel %vm378_vm0, %v352_v0, 0  ;;  %v351_v2 = vld [vmem:[%s1647_s2] sm:$0xf]  ;;  %1164 = vmatprep.subr.msk.bf16.mxu0 %vm378_vm0, %v352_v0  ;;  %s1017_s18 = sshll.u32 %s1660_s15, 3  ;;  %v1209_v53 = vld [vmem:[%s1650_s5 + $0x10] sm:$0xff]   ;;  %v1210_v54 = vld [vmem:[%s1650_s5 + $0x8] sm:$0xff]  }
  0x15   : > { %1163 = vmatpush3.bf16.msra.mxu1 %v380_v1  ;;  %1103 = vmatpush3.bf16.msra.mxu0 %v380_v1  ;;  %s1443_s21 = scalar_lea.vmem %s1646_s1, %s1017_s18  ;;  %v504_v11 = vsel %vm378_vm0, %v351_v2, 0  ;;  %s1456_s29 = scalar_lea.vmem %s1645_s0, %s1017_s18  ;;  %v1211_v55 = vld [vmem:[%s1650_s5] sm:$0xff]   ;;  %vm689_vm2 = vcmask 523264  }
  0x16   : > { %1166 = vmatprep.subr.msk.bf16.mxu1 %vm378_vm0, %v351_v2  ;;  %v335_v3 = vld [vmem:[%s1443_s21 + $0x40] sm:$0xff]  ;;  %v336_v4 = vld [vmem:[%s1443_s21 + $0x48] sm:$0xff]  ;;  %v337_v5 = vld [vmem:[%s1443_s21 + $0x50] sm:$0xff]  ;;  %1138 = vmatprep.subr.bf16.mxu0 %v1208_v52  ;;  %s1338_s18 = smov [#allocation2]  }
  0x17   : > { %v347_v6 = vpack.c.bf16 %v336_v4, %v335_v3  ;;  %v338_v7 = vld [vmem:[%s1443_s21 + $0x58] sm:$0xff]  ;;  %v339_v8 = vld [vmem:[%s1443_s21 + $0x60] sm:$0xff]  ;;  %v340_v9 = vld [vmem:[%s1443_s21 + $0x68] sm:$0xff]  ;;  %s1280_s19 = sshll.u32 %s1338_s18, 4  ;;  %s1281_s19 = int_to_ptr.vmem [resolvable:$false] %s1280_s19 }
  0x18   : > { %v348_v10 = vpack.c.bf16 %v338_v7, %v337_v5  ;;  %v349_v12 = vpack.c.bf16 %v340_v9, %v339_v8  ;;  %v327_v13 = vld [vmem:[%s1443_s21] sm:$0xff]  ;;  %v328_v14 = vld [vmem:[%s1443_s21 + $0x8] sm:$0xff]  ;;  %v329_v15 = vld [vmem:[%s1443_s21 + $0x10] sm:$0xff]  ;;  %s1282_s20 = scalar_lea.vmem %s1281_s19, 4096 }
  0x19   : > { %1112 = vmatprep.mubr.msk.bf16.mxu1 %vm353_vm1, %v347_v6  ;;  %v330_v16 = vld [vmem:[%s1443_s21 + $0x18] sm:$0xff]  ;;  %v341_v17 = vld [vmem:[%s1443_s21 + $0x70] sm:$0xff]  ;;  %v343_v18 = vpack.c.bf16 %v328_v14, %v327_v13  ;;  %v331_v21 = vld [vmem:[%s1443_s21 + $0x20] sm:$0xff] }
  0x1a   : > { %1113 = vmatmul.mubr.msk.bf16.vlgmr.msra.gmra.mxu1 %vm353_vm1, %v348_v10  ;;  %v344_v19 = vpack.c.bf16 %v330_v16, %v329_v15  ;;  %v342_v20 = vld [vmem:[%s1443_s21 + $0x78] sm:$0xff]  ;;  %v332_v22 = vld [vmem:[%s1443_s21 + $0x28] sm:$0xff]  ;;  %v303_v23 = vld [vmem:[%s1456_s29] sm:$0xff] }
  0x1b   : > { %1121 = vmatpush3.bf16.msra.mxu1 %v504_v11  ;;  %1116 = vmatprep.mubr.msk.bf16.mxu1 %vm353_vm1, %v349_v12  ;;  %v304_v24 = vld [vmem:[%s1456_s29 + $0x8] sm:$0xff]  ;;  %v345_v25 = vpack.c.bf16 %v332_v22, %v331_v21  ;;  %v350_v26 = vpack.c.bf16 %v342_v20, %v341_v17  ;;  %v333_v27 = vld [vmem:[%s1443_s21 + $0x30] sm:$0xff]  ;;  %v334_v28 = vld [vmem:[%s1443_s21 + $0x38] sm:$0xff] }
  0x1c   : > { %1104 = vmatprep.mubr.msk.bf16.mxu0 %vm353_vm1, %v343_v18  ;;  %v319_v29 = vpack.c.bf16 %v304_v24, %v303_v23  ;;  %v346_v30 = vpack.c.bf16 %v334_v28, %v333_v27  ;;  %v305_v31 = vld [vmem:[%s1456_s29 + $0x10] sm:$0xff]  ;;  %v306_v32 = vld [vmem:[%s1456_s29 + $0x18] sm:$0xff]  ;;  %v307_v33 = vld [vmem:[%s1456_s29 + $0x20] sm:$0xff] }
  0x1d   : > { %1105 = vmatmul.mubr.msk.bf16.vlgmr.msra.gmra.mxu0 %vm353_vm1, %v344_v19  ;;  %v308_v34 = vld [vmem:[%s1456_s29 + $0x28] sm:$0xff]  ;;  %v320_v35 = vpack.c.bf16 %v306_v32, %v305_v31  ;;  %v309_v37 = vld [vmem:[%s1456_s29 + $0x30] sm:$0xff]  ;;  %v310_v38 = vld [vmem:[%s1456_s29 + $0x38] sm:$0xff] }
  0x1e   : > { %1108 = vmatprep.mubr.msk.bf16.mxu0 %vm353_vm1, %v345_v25  ;;  %v321_v36 = vpack.c.bf16 %v308_v34, %v307_v33  ;;  %v311_v39 = vld [vmem:[%s1456_s29 + $0x40] sm:$0xff]  ;;  %v312_v40 = vld [vmem:[%s1456_s29 + $0x48] sm:$0xff]  ;;  %v322_v41 = vpack.c.bf16 %v310_v38, %v309_v37  ;;  %v313_v43 = vld [vmem:[%s1456_s29 + $0x50] sm:$0xff]  ;;  %1139 = vmatpush3.bf16.msra.mxu0 %v1208_v52 }
  0x1f   : > { %v323_v42 = vpack.c.bf16 %v312_v40, %v311_v39  ;;  %v314_v44 = vld [vmem:[%s1456_s29 + $0x58] sm:$0xff]  ;;  %v315_v45 = vld [vmem:[%s1456_s29 + $0x60] sm:$0xff]  ;;  %v316_v46 = vld [vmem:[%s1456_s29 + $0x68] sm:$0xff]  ;;  %1140 = vmatprep.subr.bf16.mxu0 %v1209_v53 }
  0x20   : > { %v324_v47 = vpack.c.bf16 %v314_v44, %v313_v43  ;;  %v325_v48 = vpack.c.bf16 %v316_v46, %v315_v45  ;;  %v317_v49 = vld [vmem:[%s1456_s29 + $0x70] sm:$0xff]  ;;  %v318_v50 = vld [vmem:[%s1456_s29 + $0x78] sm:$0xff]  ;;  %v1522_v10 = vld [vmem:[%s1649_s4] ss:$0 sm:$0xff]  ;;  %s1015_s29 = sshll.u32 %s286_s23, 7 }
  0x21   : > { %v326_v51 = vpack.c.bf16 %v318_v50, %v317_v49  ;;  %s1576_s8 = scalar_lea.vmem [#allocation2], %s1015_s29 }
  0x22   : > { %1117 = vmatmul.mubr.msk.bf16.gmra.mxu1 %vm353_vm1, %v350_v26  ;;  %1141 = vmatpush3.bf16.msra.mxu0 %v1209_v53  ;;  %s937_s13 = sshll.u32 %s1576_s8, 4  ;;  %s1599_s13 = int_to_ptr.vmem [resolvable:$true] %s937_s13 }
  0x23   : > { %1122 = vmatprep.mubr.msk.bf16.mxu1 %vm353_vm1, %v319_v29  ;;  %1142 = vmatprep.subr.bf16.mxu0 %v1210_v54  ;;  %s1276_s28 = scalar_lea.vmem %s1599_s13, 2048  ;;  %p1283_p0 = scmp.lt.s32.totalorder %s1599_s13, %s1281_s19 }
  0x24   : > { %p1277_p11 = scmp.ne.s32.totalorder %s1599_s13, %s1276_s28  ;;  %p1284_p1 = scmp.lt.s32.totalorder %s1282_s20, %s1276_s28 }
  0x25   : > { %1109 = vmatmul.mubr.msk.bf16.gmra.mxu0 %vm353_vm1, %v346_v30 }
  0x26   : > { %1143 = vmatpush3.bf16.msra.mxu0 %v1210_v54  ;;  %p1278_p12 = pnand %p1277_p11, %p1419_p5  ;;  %p1285_p2 = por %p1284_p1, %p1283_p0 }
  0x27   : > { %1144 = vmatprep.subr.bf16.mxu0 %v1211_v55 }
  0x28   : > { %p1279_p13 = pneg %p1278_p12 }
  0x2a   : > { %1123 = vmatmul.mubr.msk.bf16.vlgmr.msra.gmra.mxu1 %vm353_vm1, %v320_v35  ;;  %1145 = vmatpush3.bf16.msra.mxu0 %v1211_v55  ;;  %p1286_p3 = pnand %p1285_p2, %p1279_p13 }
  0x2b   : > { %1126 = vmatprep.mubr.msk.bf16.mxu1 %vm353_vm1, %v321_v36 }
  0x32   : > { %1127 = vmatmul.mubr.msk.bf16.gmra.mxu1 %vm353_vm1, %v322_v41 }
  0x33   : > { %1130 = vmatprep.mubr.msk.bf16.mxu1 %vm353_vm1, %v323_v42 }
  0x3a   : > { %1131 = vmatmul.mubr.msk.bf16.gmra.mxu1 %vm353_vm1, %v324_v47 }
  0x3b   : > { %1134 = vmatprep.mubr.msk.bf16.mxu1 %vm353_vm1, %v325_v48 }
  0x42   : > { %1135 = vmatmul.mubr.msk.bf16.gmra.mxu1 %vm353_vm1, %v326_v51 }
  0xda   : > { %v1114_v56 = vpop.f32.mrf.mxu1 }
  0xdc   : > { %v448_v57 = vpop.f32.mrf.mxu1 }
  0xdd   : > { %v1106_v58 = vpop.f32.mrf.mxu0 }
  0xde   : > { %v1115_v59 = vpop.f32.mrf.mxu1 }
  0xdf   : > { %v416_v61 = vpop.f32.mrf.mxu0 }
  0xe0   : > { %v451_v60 = vpop.f32.mrf.mxu1 }
  0xe1   : > { %v1107_v0 = vpop.f32.mrf.mxu0 }
  0xe2   : > { %v1511_v62 = vpop.f32.mrf.mxu1 }
  0xe3   : > { %v419_v3 = vpop.f32.mrf.mxu0 }
  0xe4   : > { %v1513_v63 = vpop.f32.mrf.mxu1 }
  0xe5   : > { %v1110_v5 = vpop.f32.mrf.mxu0 }
  0xe6   : > { %v1515_v1 = vpop.f32.mrf.mxu1 }
  0xe7   : > { %v432_v12 = vpop.f32.mrf.mxu0 }
  0xe8   : > { %v1517_v2 = vpop.f32.mrf.mxu1 }
  0xe9   : > { %v1111_v21 = vpop.f32.mrf.mxu0 }
  0xea   : > { %v1124_v4 = vpop.f32.mrf.mxu1 }
  0xeb   : > { %v549_v8 = vadd.f32 %v1124_v4, %v1106_v58  ;;  %v435_v32 = vpop.f32.mrf.mxu0 }
  0xec   : > { %v540_v6 = vpop.f32.mrf.mxu1 }
  0xed   : > { %v541_v7 = vadd.f32 %v540_v6, %v416_v61  ;;  %v612_v17 = vadd.f32 %v1522_v10, %v549_v8 }
  0xee   : > { %v1125_v9 = vpop.f32.mrf.mxu1 }
  0xef   : > { %v552_v11 = vadd.f32 %v1125_v9, %v1107_v0  ;;  %v610_v14 = vadd.f32 %v1522_v10, %v541_v7  ;;  %v628_v26 = vmax.f32 %v612_v17, 0.0 }
  0xf0   : > { %v543_v13 = vpop.f32.mrf.mxu1 }
  0xf1   : > { %v613_v15 = vadd.f32 %v1522_v10, %v552_v11  ;;  %v544_v16 = vadd.f32 %v543_v13, %v419_v3  ;;  %v626_v23 = vmax.f32 %v610_v14, 0.0 }
  0xf2   : > { %v1128_v18 = vpop.f32.mrf.mxu1 }
  0xf3   : > { %v611_v19 = vadd.f32 %v1522_v10, %v544_v16  ;;  %v629_v20 = vmax.f32 %v613_v15, 0.0  ;;  %v565_v27 = vadd.f32 %v1128_v18, %v1110_v5 }
  0xf4   : > { %v556_v22 = vpop.f32.mrf.mxu1 }
  0xf5   : > { %v627_v24 = vmax.f32 %v611_v19, 0.0  ;;  %v557_v25 = vadd.f32 %v556_v22, %v432_v12  ;;  %v643_v31 = vpack.c.bf16 %v629_v20, %v628_v26  ;;  %v616_v37 = vadd.f32 %v1522_v10, %v565_v27 }
  0xf6   : > { %v1129_v28 = vpop.f32.mrf.mxu1 }
  0xf7   : > { %v642_v29 = vpack.c.bf16 %v627_v24, %v626_v23  ;;  %v568_v30 = vadd.f32 %v1129_v28, %v1111_v21  ;;  %v614_v34 = vadd.f32 %v1522_v10, %v557_v25  ;;  %v632_v45 = vmax.f32 %v616_v37, 0.0 }
  0xf8   : > { %v559_v33 = vpop.f32.mrf.mxu1 }
  0xf9   : > { %v617_v35 = vadd.f32 %v1522_v10, %v568_v30  ;;  %v560_v36 = vadd.f32 %v559_v33, %v435_v32  ;;  %1146 = vmatprep.mubr.msk.bf16.mxu0 %vm689_vm2, %v642_v29  ;;  %v630_v42 = vmax.f32 %v614_v34, 0.0 }
  0xfa   : > { %v1132_v38 = vpop.f32.mrf.mxu1  ;;  %1147 = vmatmul.mubr.msk.bf16.vlgmr.msra.gmra.mxu0 %vm689_vm2, %v643_v31 }
  0xfb   : > { %v615_v39 = vadd.f32 %v1522_v10, %v560_v36  ;;  %v633_v40 = vmax.f32 %v617_v35, 0.0  ;;  %v581_v46 = vadd.f32 %v1132_v38, %v1114_v56 }
  0xfc   : > { %v572_v41 = vpop.f32.mrf.mxu1 }
  0xfd   : > { %v631_v43 = vmax.f32 %v615_v39, 0.0  ;;  %v573_v44 = vadd.f32 %v572_v41, %v448_v57  ;;  %v645_v50 = vpack.c.bf16 %v633_v40, %v632_v45  ;;  %v620_v55 = vadd.f32 %v1522_v10, %v581_v46 }
  0xfe   : > { %v1133_v47 = vpop.f32.mrf.mxu1 }
  0xff   : > { %v644_v48 = vpack.c.bf16 %v631_v43, %v630_v42  ;;  %v584_v49 = vadd.f32 %v1133_v47, %v1115_v59  ;;  %v618_v52 = vadd.f32 %v1522_v10, %v573_v44  ;;  %v636_v4 = vmax.f32 %v620_v55, 0.0 }
 0x100   : > { %v575_v51 = vpop.f32.mrf.mxu1 }
 0x101   : > { %v621_v53 = vadd.f32 %v1522_v10, %v584_v49  ;;  %v576_v54 = vadd.f32 %v575_v51, %v451_v60  ;;  %1150 = vmatprep.mubr.msk.bf16.mxu0 %vm689_vm2, %v644_v48  ;;  %v634_v0 = vmax.f32 %v618_v52, 0.0 }
 0x102   : > { %v1136_v58 = vpop.f32.mrf.mxu1  ;;  %1151 = vmatmul.mubr.msk.bf16.gmra.mxu0 %vm689_vm2, %v645_v50 }
 0x103   : > { %v619_v57 = vadd.f32 %v1522_v10, %v576_v54  ;;  %v637_v56 = vmax.f32 %v621_v53, 0.0  ;;  %v597_v5 = vadd.f32 %v1136_v58, %v1511_v62 }
 0x104   : > { %v588_v61 = vpop.f32.mrf.mxu1 }
 0x105   : > { %v635_v59 = vmax.f32 %v619_v57, 0.0  ;;  %v589_v3 = vadd.f32 %v588_v61, %v1513_v63  ;;  %v647_v8 = vpack.c.bf16 %v637_v56, %v636_v4  ;;  %v624_v14 = vadd.f32 %v1522_v10, %v597_v5 }
 0x106   : > { %v1137_v6 = vpop.f32.mrf.mxu1 }
 0x107   : > { %v646_v60 = vpack.c.bf16 %v635_v59, %v634_v0  ;;  %v600_v7 = vadd.f32 %v1137_v6, %v1515_v1  ;;  %v622_v11 = vadd.f32 %v1522_v10, %v589_v3  ;;  %v640_v1 = vmax.f32 %v624_v14, 0.0 }
 0x108   : > { %v591_v9 = vpop.f32.mrf.mxu1 }
 0x109   : > { %v625_v12 = vadd.f32 %v1522_v10, %v600_v7  ;;  %v592_v13 = vadd.f32 %v591_v9, %v1517_v2  ;;  %1154 = vmatprep.mubr.msk.bf16.mxu0 %vm689_vm2, %v646_v60  ;;  %v638_v15 = vmax.f32 %v622_v11, 0.0  ;;  %v1555_v2 = vld [vmem:[%s1651_s6] ss:$0 sm:$0xff] }
 0x10a   : > { %1155 = vmatmul.mubr.msk.bf16.gmra.mxu0 %vm689_vm2, %v647_v8 }
 0x10b   : > { %v623_v62 = vadd.f32 %v1522_v10, %v592_v13  ;;  %v641_v63 = vmax.f32 %v625_v12, 0.0 }
 0x10d   : > { %v639_v16 = vmax.f32 %v623_v62, 0.0  ;;  %v649_v18 = vpack.c.bf16 %v641_v63, %v640_v1 }
 0x10f   : > { %v648_v17 = vpack.c.bf16 %v639_v16, %v638_v15 }
 0x111   : > { %1158 = vmatprep.mubr.msk.bf16.mxu0 %vm689_vm2, %v648_v17 }
 0x112   : > { %1159 = vmatmul.mubr.msk.bf16.gmra.mxu0 %vm689_vm2, %v649_v18 }
 0x1ba   : > { %v1148_v19 = vpop.f32.mrf.mxu0 }
 0x1bb   : > { %v757_v20 = vadd.f32 %v1148_v19, %v1555_v2 }
 0x1bc   : > { %v748_v21 = vpop.f32.mrf.mxu0 }
 0x1bd   : > { %v1052_v10 = vmul.f32 -1.442695, %v757_v20  ;;  %v749_v22 = vadd.f32 %v1555_v2, %v748_v21 }
 0x1be   : > { %v1149_v23 = vpop.f32.mrf.mxu0 }
 0x1bf   : > { %1212 = vpow2.f32 %v1052_v10  ;;  %v1050_v24 = vmul.f32 -1.442695, %v749_v22  ;;  %v760_v25 = vadd.f32 %v1149_v23, %v1555_v2 }
 0x1c0   : > { %v751_v26 = vpop.f32.mrf.mxu0 }
 0x1c1   : > { %1214 = vpow2.f32 %v1050_v24  ;;  %v1053_v27 = vmul.f32 -1.442695, %v760_v25  ;;  %v752_v28 = vadd.f32 %v1555_v2, %v751_v26 }
 0x1c2   : > { %v1152_v29 = vpop.f32.mrf.mxu0 }
 0x1c3   : > { %1216 = vpow2.f32 %v1053_v27  ;;  %v1051_v30 = vmul.f32 -1.442695, %v752_v28  ;;  %v773_v31 = vadd.f32 %v1152_v29, %v1555_v2 }
 0x1c4   : > { %v764_v32 = vpop.f32.mrf.mxu0 }
 0x1c5   : > { %1218 = vpow2.f32 %v1051_v30  ;;  %v1056_v33 = vmul.f32 -1.442695, %v773_v31  ;;  %v765_v34 = vadd.f32 %v1555_v2, %v764_v32 }
 0x1c6   : > { %v1153_v35 = vpop.f32.mrf.mxu0 }
 0x1c7   : > { %1220 = vpow2.f32 %v1056_v33  ;;  %v1054_v36 = vmul.f32 -1.442695, %v765_v34  ;;  %v776_v37 = vadd.f32 %v1153_v35, %v1555_v2 }
 0x1c8   : > { %v767_v38 = vpop.f32.mrf.mxu0 }
 0x1c9   : > { %1222 = vpow2.f32 %v1054_v36  ;;  %v1057_v39 = vmul.f32 -1.442695, %v776_v37  ;;  %v768_v40 = vadd.f32 %v1555_v2, %v767_v38 }
 0x1ca   : > { %v1156_v41 = vpop.f32.mrf.mxu0 }
 0x1cb   : > { %1224 = vpow2.f32 %v1057_v39  ;;  %v1055_v42 = vmul.f32 -1.442695, %v768_v40  ;;  %v789_v43 = vadd.f32 %v1156_v41, %v1555_v2 }
 0x1cc   : > { %v1213_v44 = vpop.eup %1212  ;;  %v780_v45 = vpop.f32.mrf.mxu0 }
 0x1cd   : > { %v861_v46 = vadd.f32 1.0, %v1213_v44  ;;  %1226 = vpow2.f32 %v1055_v42  ;;  %v1060_v47 = vmul.f32 -1.442695, %v789_v43  ;;  %v781_v48 = vadd.f32 %v1555_v2, %v780_v45 }
 0x1ce   : > { %v1215_v49 = vpop.eup %1214  ;;  %v1157_v50 = vpop.f32.mrf.mxu0 }
 0x1cf   : > { %1228 = vrcp.f32 %v861_v46  ;;  %v859_v51 = vadd.f32 1.0, %v1215_v49  ;;  %v1058_v52 = vmul.f32 -1.442695, %v781_v48  ;;  %v792_v53 = vadd.f32 %v1157_v50, %v1555_v2 }
 0x1d0   : > { %v1217_v54 = vpop.eup %1216  ;;  %1230 = vpow2.f32 %v1060_v47  ;;  %v783_v55 = vpop.f32.mrf.mxu0 }
 0x1d1   : > { %1232 = vrcp.f32 %v859_v51  ;;  %v862_v58 = vadd.f32 1.0, %v1217_v54  ;;  %v1061_v57 = vmul.f32 -1.442695, %v792_v53  ;;  %v784_v56 = vadd.f32 %v1555_v2, %v783_v55 }
 0x1d2   : > { %v1219_v61 = vpop.eup %1218  ;;  %1234 = vpow2.f32 %v1058_v52  ;;  %v1160_v0 = vpop.f32.mrf.mxu0 }
 0x1d3   : > { %1236 = vrcp.f32 %v862_v58  ;;  %v860_v59 = vadd.f32 1.0, %v1219_v61  ;;  %v1059_v3 = vmul.f32 -1.442695, %v784_v56  ;;  %v805_v4 = vadd.f32 %v1160_v0, %v1555_v2 }
 0x1d4   : > { %v1221_v5 = vpop.eup %1220  ;;  %1238 = vpow2.f32 %v1061_v57  ;;  %v796_v6 = vpop.f32.mrf.mxu0 }
 0x1d5   : > { %1240 = vrcp.f32 %v860_v59  ;;  %v865_v60 = vadd.f32 1.0, %v1221_v5  ;;  %v1064_v7 = vmul.f32 -1.442695, %v805_v4  ;;  %v797_v8 = vadd.f32 %v1555_v2, %v796_v6 }
 0x1d6   : > { %v1223_v9 = vpop.eup %1222  ;;  %1242 = vpow2.f32 %v1059_v3  ;;  %v1161_v11 = vpop.f32.mrf.mxu0 }
 0x1d7   : > { %1244 = vrcp.f32 %v865_v60  ;;  %v863_v12 = vadd.f32 1.0, %v1223_v9  ;;  %v1062_v13 = vmul.f32 -1.442695, %v797_v8  ;;  %v808_v14 = vadd.f32 %v1161_v11, %v1555_v2 }
 0x1d8   : > { %v1225_v62 = vpop.eup %1224  ;;  %1246 = vpow2.f32 %v1064_v7  ;;  %v799_v63 = vpop.f32.mrf.mxu0 }
 0x1d9   : > { %1248 = vrcp.f32 %v863_v12  ;;  %v866_v15 = vadd.f32 1.0, %v1225_v62  ;;  %v1065_v16 = vmul.f32 -1.442695, %v808_v14  ;;  %v800_v1 = vadd.f32 %v1555_v2, %v799_v63 }
 0x1da   : > { %v1227_v17 = vpop.eup %1226  ;;  %1250 = vpow2.f32 %v1062_v13 }
 0x1db   : > { %1252 = vrcp.f32 %v866_v15  ;;  %v864_v18 = vadd.f32 1.0, %v1227_v17  ;;  %v1063_v19 = vmul.f32 -1.442695, %v800_v1 }
 0x1dc   : > { %v1229_v20 = vpop.eup %1228  ;;  %1254 = vpow2.f32 %v1065_v16 }
 0x1dd   : > { %v1231_v21 = vpop.eup %1230  ;;  %909 = vst [vmem:[%s1576_s8 + $0x10] sm:$0xff] %v1229_v20  ;;  %1256 = vrcp.f32 %v864_v18 }
 0x1de   : > { %v1233_v10 = vpop.eup %1232  ;;  %v869_v22 = vadd.f32 1.0, %v1231_v21  ;;  %1258 = vpow2.f32 %v1063_v19 }
 0x1df   : > { %v1235_v2 = vpop.eup %1234  ;;  %907 = vst [vmem:[%s1576_s8] sm:$0xff] %v1233_v10 }
 0x1e0   : > { %v1237_v23 = vpop.eup %1236  ;;  %1260 = vrcp.f32 %v869_v22  ;;  %v867_v24 = vadd.f32 1.0, %v1235_v2 }
 0x1e1   : > { %v1239_v25 = vpop.eup %1238  ;;  %910 = vst [vmem:[%s1576_s8 + $0x18] sm:$0xff] %v1237_v23 }
 0x1e2   : > { %v1241_v26 = vpop.eup %1240  ;;  %1262 = vrcp.f32 %v867_v24  ;;  %v870_v27 = vadd.f32 1.0, %v1239_v25 }
 0x1e3   : > { %v1243_v28 = vpop.eup %1242  ;;  %908 = vst [vmem:[%s1576_s8 + $0x8] sm:$0xff] %v1241_v26 }
 0x1e4   : > { %v1245_v29 = vpop.eup %1244  ;;  %1264 = vrcp.f32 %v870_v27  ;;  %v868_v30 = vadd.f32 1.0, %v1243_v28 }
 0x1e5   : > { %v1247_v31 = vpop.eup %1246  ;;  %913 = vst [vmem:[%s1576_s8 + $0x30] sm:$0xff] %v1245_v29 }
 0x1e6   : > { %v1249_v32 = vpop.eup %1248  ;;  %1266 = vrcp.f32 %v868_v30  ;;  %v873_v33 = vadd.f32 1.0, %v1247_v31 }
 0x1e7   : > { %v1251_v34 = vpop.eup %1250  ;;  %911 = vst [vmem:[%s1576_s8 + $0x20] sm:$0xff] %v1249_v32 }
 0x1e8   : > { %v1253_v35 = vpop.eup %1252  ;;  %1268 = vrcp.f32 %v873_v33  ;;  %v871_v36 = vadd.f32 1.0, %v1251_v34 }
 0x1e9   : > { %v1255_v37 = vpop.eup %1254  ;;  %914 = vst [vmem:[%s1576_s8 + $0x38] sm:$0xff] %v1253_v35 }
 0x1ea   : > { %v1257_v38 = vpop.eup %1256  ;;  %1270 = vrcp.f32 %v871_v36  ;;  %v874_v39 = vadd.f32 1.0, %v1255_v37 }
 0x1eb   : > { %v1259_v40 = vpop.eup %1258  ;;  %912 = vst [vmem:[%s1576_s8 + $0x28] sm:$0xff] %v1257_v38 }
 0x1ec   : > { %1272 = vrcp.f32 %v874_v39  ;;  %v872_v41 = vadd.f32 1.0, %v1259_v40 }
 0x1ed   : > { %v1261_v42 = vpop.eup %1260 }
 0x1ee   : > { %917 = vst [vmem:[%s1576_s8 + $0x50] sm:$0xff] %v1261_v42  ;;  %1274 = vrcp.f32 %v872_v41 }
 0x1ef   : > { %v1263_v43 = vpop.eup %1262 }
 0x1f0   : > { %915 = vst [vmem:[%s1576_s8 + $0x40] sm:$0xff] %v1263_v43 }
 0x1f1   : > { %v1265_v44 = vpop.eup %1264 }
 0x1f2   : > { %918 = vst [vmem:[%s1576_s8 + $0x58] sm:$0xff] %v1265_v44 }
 0x1f3   : > { %v1267_v45 = vpop.eup %1266 }
 0x1f4   : > { %916 = vst [vmem:[%s1576_s8 + $0x48] sm:$0xff] %v1267_v45 }
 0x1f5   : > { %v1269_v46 = vpop.eup %1268 }
 0x1f6   : > { %921 = vst [vmem:[%s1576_s8 + $0x70] sm:$0xff] %v1269_v46 }
 0x1f7   : > { %v1271_v47 = vpop.eup %1270 }
 0x1f8   : > { %919 = vst [vmem:[%s1576_s8 + $0x60] sm:$0xff] %v1271_v47 }
 0x1f9   : > { %v1273_v48 = vpop.eup %1272 }
 0x1fa   : > { %922 = vst [vmem:[%s1576_s8 + $0x78] sm:$0xff] %v1273_v48 }
 0x1fb   : > { %v1275_v49 = vpop.eup %1274 }
 0x1fc   : > { %920 = vst [vmem:[%s1576_s8 + $0x68] sm:$0xff] %v1275_v49 }
 0x1fd   : > { %1289 = shalt.err (!%p1286_p3)
}
 0x1fe   : > { %s1290_s21 = scalar_lea.hbm %s1597_s16, 2048  ;;  %s1294_s29 = scalar_lea.hbm %s1652_s7, 4096 }
 0x1ff   : > { %p1291_p4 = scmp.ne.s32.totalorder %s1597_s16, %s1290_s21  ;;  %p1295_p9 = scmp.lt.s32.totalorder %s1597_s16, %s1652_s7 }
 0x200   : > { %p1296_p10 = scmp.lt.s32.totalorder %s1294_s29, %s1290_s21 }
 0x201   : > { %p1292_p7 = pnand %p1291_p4, %p1419_p5 }
 0x202   : > { %p1297_p11 = por %p1296_p10, %p1295_p9 }
 0x203   : > { %p1293_p8 = pneg %p1292_p7 }
 0x205   : > { %p1298_p12 = pnand %p1297_p11, %p1293_p8 }
 0x207   : > { %1301 = shalt.err (!%p1298_p12)
}
 0x208   : > { %s1339_s14 = smov 128   ;;  %s1340_s15 = smov 8  }
 0x209   : > { %1167 = dma.vmem_to_hbm [thread:$0]  (%p1419_p5), %s1599_s13, 2048, %s1597_s16, %s1605_s17, %s1339_s14, %s1339_s14, %s1340_s15  }
 0x20a PF: > { %p1173_p13 = scmp.ge.s32.totalorder %s1336_s27, 2  ;;  %s952_s28 = sand.u32 1, %s1324_s24  }
 0x20b   : > { %s953_s18 = scalar_lea.sflag [#allocation3], %s952_s28 }
 0x20c   : > { %p1170_p0 = pnand %p1173_p13, %p1423_p6 }
 0x20e   : > { %p1171_p1 = pneg %p1170_p0 }
 0x210   : > { %1319 = dma.done.wait (%p1171_p1), %s953_s18, 2048  }
 0x211   : > { %1321 = vsyncadd (%p1171_p1), %s953_s18, 4294965248  ;;  %p17_p2 = scmp.ge.s32.totalorder %s1406_s30, 4   ;;  %s1655_s24 = smov %s1328_s25 }
 0x212   : > { %s1656_s25 = smov %s1332_s26  ;;  %s1657_s26 = smov %s1417_s10 }
 0x213   : > { %s1658_s27 = smov %s1406_s30  ;;  %19 = sbr.rel (!%p17_p2) target bundleno = 3 (0x3), region = 86 }
 0x218   :  { %958 = vsyncpa [#allocation3], 1 }
 0x219   :  { %960 = vsyncpa [#allocation3 + $0x1], 1 }

</bundles_post_ra>
